<compile_context>
chip_gen: v7x
topology: tpu7x:2x2x1
jax: 0.10.0
libtpu: 0.0.40
codegen_flags: <defaults>
</compile_context>

<pallas_src>
import functools

import jax
import jax.numpy as jnp
from jax import lax
from jax.experimental import pallas as pl
from jax.experimental.pallas import tpu as pltpu

_LANES = 128


def _tversky_partials_kernel(p_ref, t_ref, out_ref, *,
                             rows_total, rows_tile, chunk_rows, num_chunks,
                             need_mask, unroll):
    """One grid step: stream a (B, rows_tile, 128) slab of p and t and write a
    single lane-dense (3, B, 128) block of partial sums:
        out[0] = sum(p * t)   (TP partial)
        out[1] = sum(p)
        out[2] = sum(t)
    """
    b = p_ref.shape[0]
    k = pl.program_id(0)

    def reduce_block(masked):
        if masked:
            # Hoisted once (not per chunk): local row ids within a chunk.
            local_ids = lax.broadcasted_iota(
                jnp.int32, (b, chunk_rows, _LANES), 1)
            rows_valid = rows_total - k * rows_tile  # valid rows in this block

        def chunk_body(i, accs):
            pt, ps, ts = accs
            start = pl.multiple_of(i * chunk_rows, chunk_rows)
            # Native-dtype loads; the f32 cast only touches one bounded chunk.
            p = p_ref[:, pl.ds(start, chunk_rows), :].astype(jnp.float32)
            t = t_ref[:, pl.ds(start, chunk_rows), :].astype(jnp.float32)
            if masked:
                valid = local_ids < (rows_valid - i * chunk_rows)
                p = jnp.where(valid, p, 0.0)
                t = jnp.where(valid, t, 0.0)
            pt = pt + jnp.sum(p * t, axis=1)
            ps = ps + jnp.sum(p, axis=1)
            ts = ts + jnp.sum(t, axis=1)
            return pt, ps, ts

        zero = jnp.zeros((b, _LANES), jnp.float32)
        pt, ps, ts = lax.fori_loop(0, num_chunks, chunk_body,
                                   (zero, zero, zero), unroll=unroll)
        # Single fused, lane-dense writeback per grid step.
        out_ref[0, :, :] = pt
        out_ref[1, :, :] = ps
        out_ref[2, :, :] = ts

    if need_mask:
        last = pl.num_programs(0) - 1

        @pl.when(k != last)
        def _():
            reduce_block(False)

        @pl.when(k == last)
        def _():
            reduce_block(True)
    else:
        reduce_block(False)


def _vmem_physical_bytes():
    """Best-effort physical VMEM capacity; conservative fallback (v7x per-TC)."""
    try:
        cap = getattr(pltpu.get_tpu_info(), "vmem_capacity_bytes", None)
        if cap:
            return int(cap)
    except Exception:
        pass
    return 64 * 1024 * 1024


def tversky_loss(predict, target, *, smooth=1.0, alpha=1.0, beta=1.0,
                 reduction='mean'):
    """Tversky loss computed with a streaming Pallas TPU kernel."""
    assert predict.shape[0] == target.shape[0], "batch sizes don't match"
    B = predict.shape[0]

    # Free, contiguous reshapes (no HBM copies) — mirrors predict.view(B, -1).
    p2 = predict.reshape(B, -1)
    t2 = target.reshape(B, -1)
    N = p2.shape[1]

    # Rare fallback only when C*H*W is not a multiple of 128.
    if N % _LANES:
        pad = _LANES - (N % _LANES)
        p2 = jnp.pad(p2, ((0, 0), (0, pad)))  # zero pad is exact for TP/FP/FN
        t2 = jnp.pad(t2, ((0, 0), (0, pad)))
    R = p2.shape[1] // _LANES
    p3 = p2.reshape(B, R, _LANES)
    t3 = t2.reshape(B, R, _LANES)

    # ---- Tile sizing -------------------------------------------------------
    # Packed sublane tile of the native dtypes (8 f32 / 16 bf16 / 32 int8).
    sub_p = max(8, 32 // p3.dtype.itemsize)
    sub_t = max(8, 32 // t3.dtype.itemsize)
    sub = max(sub_p, sub_t)

    # VMEM budget for the 2-input x 2-buffer pipeline.  In-kernel f32
    # intermediates are chunk-bounded now, so this really is the footprint.
    vmem_cap = _vmem_physical_bytes()
    budget = max(4 << 20, min(vmem_cap // 4, 24 << 20))

    bytes_per_row_pair = B * _LANES * (p3.dtype.itemsize + t3.dtype.itemsize)
    budget_rows = max(sub, budget // (2 * bytes_per_row_pair))
    budget_rows = (budget_rows // sub) * sub

    # Keep num_blocks >= 2 whenever possible so the "parallel" grid axis can
    # shard across v7x's two TensorCores.
    half_rows = ((-(-R // 2) + sub - 1) // sub) * sub
    rows_tile = min(budget_rows, half_rows)
    if rows_tile >= R:
        rows_tile = R  # tiny input: single full-extent block (always legal)

    # Inner chunk bounds the live f32 intermediates to a few vregs.
    chunk_rows = min(rows_tile, 512)
    if rows_tile > chunk_rows:
        rows_tile = (rows_tile // chunk_rows) * chunk_rows  # exact multiple
    num_chunks = max(1, rows_tile // chunk_rows)

    num_blocks = pl.cdiv(R, rows_tile)
    need_mask = (R % rows_tile) != 0
    unroll = num_chunks <= 8

    kernel = functools.partial(
        _tversky_partials_kernel,
        rows_total=R, rows_tile=rows_tile, chunk_rows=chunk_rows,
        num_chunks=num_chunks, need_mask=need_mask, unroll=unroll)

    # Explicit scoped-VMEM limit: pipeline buffers + small headroom, so v5e's
    # 16 MiB default window is not the limiter.  Capped at physical capacity.
    pipeline_bytes = 2 * B * rows_tile * _LANES * (
        p3.dtype.itemsize + t3.dtype.itemsize)
    vmem_limit = int(min(max(pipeline_bytes + (4 << 20), 32 << 20), vmem_cap))

    # Deeper buffering only when the derived tile ends up small and there are
    # enough steps for it to matter (keeps v7x's fast HBM saturated).
    per_input_tile = B * rows_tile * _LANES * p3.dtype.itemsize
    spec_kwargs = ({"pipeline_mode": pl.Buffered(3)}
                   if (per_input_tile < (1 << 20) and num_blocks >= 4) else {})

    in_spec_p = pl.BlockSpec((B, rows_tile, _LANES), lambda k: (0, k, 0),
                             **spec_kwargs)
    in_spec_t = pl.BlockSpec((B, rows_tile, _LANES), lambda k: (0, k, 0),
                             **spec_kwargs)
    out_spec = pl.BlockSpec((3, B, _LANES), lambda k: (0, 0, k))

    parts = pl.pallas_call(
        kernel,
        out_shape=jax.ShapeDtypeStruct((3, B, num_blocks * _LANES),
                                       jnp.float32),
        grid_spec=pltpu.PrefetchScalarGridSpec(
            num_scalar_prefetch=0,
            grid=(num_blocks,),
            in_specs=[in_spec_p, in_spec_t],
            out_specs=out_spec,
        ),
        compiler_params=pltpu.CompilerParams(
            dimension_semantics=("parallel",),
            vmem_limit_bytes=vmem_limit),
    )(p3, t3)

    # Tiny plain-JAX epilogue: final cross-lane reduce + Tversky math.
    tp = jnp.sum(parts[0], axis=-1)
    sp = jnp.sum(parts[1], axis=-1)
    st = jnp.sum(parts[2], axis=-1)
    fp = sp - tp
    fn = st - tp
    tversky = (tp + smooth) / (tp + alpha * fp + beta * fn + smooth)
    loss = 1.0 - tversky
    if reduction == 'mean':
        return loss.mean()
    if reduction == 'sum':
        return loss.sum()
    if reduction in (None, 'none'):
        return loss  # per-batch losses
    raise ValueError(f"unsupported reduction: {reduction!r}")


def _tversky_loss_ref(predict, target, smooth=1.0, alpha=1.0, beta=1.0):
    B = predict.shape[0]
    p = predict.reshape(B, -1).astype(jnp.float32)
    t = target.reshape(B, -1).astype(jnp.float32)
    tp = jnp.sum(p * t, axis=1)
    fp = jnp.sum((1.0 - t) * p, axis=1)
    fn = jnp.sum(t * (1.0 - p), axis=1)
    tversky = (tp + smooth) / (tp + alpha * fp + beta * fn + smooth)
    return jnp.mean(1.0 - tversky)


if __name__ == "__main__":
    key = jax.random.PRNGKey(0)
    k1, k2 = jax.random.split(key)

    B, C, H, W = 2, 4, 16, 16
    # predict: probabilities in [0, 1]; target: binary mask.
    predict = jax.nn.sigmoid(jax.random.normal(k1, (B, C, H, W), jnp.float32))
    target = (jax.random.uniform(k2, (B, C, H, W)) > 0.5).astype(jnp.float32)

    loss = tversky_loss(predict, target, smooth=1, alpha=1, beta=1)
    loss = jax.block_until_ready(loss)

    ref = _tversky_loss_ref(predict, target, 1.0, 1.0, 1.0)
    assert jnp.allclose(loss, ref, atol=1e-5, rtol=1e-5), (loss, ref)

    print("KERNEL_OK")
</pallas_src>

<mosaic_0001>
module attributes {stable_mosaic.version = 11 : i64} {
  func.func @_tversky_partials_kernel(%arg0: i32, %arg1: memref<2x8x128xf32, #tpu.memory_space<vmem>>, %arg2: memref<2x8x128xf32, #tpu.memory_space<vmem>>, %arg3: memref<3x2x128xf32, #tpu.memory_space<vmem>>) attributes {dimension_semantics = [#tpu.dimension_semantics<parallel>], iteration_bounds = array<i64: 1>, scalar_prefetch = 0 : i64, scratch_operands = 0 : i64, tpu.core_type = #tpu.core_type<tc>, window_params = [{transform_indices = @transform_0, window_bounds = array<i64: 2, 8, 128>}, {transform_indices = @transform_1, window_bounds = array<i64: 2, 8, 128>}, {transform_indices = @transform_2, window_bounds = array<i64: 3, 2, 128>}]} {
    %cst = arith.constant 0.000000e+00 : f32
    %0 = vector.broadcast %cst : f32 to vector<2x128xf32>
    %c0_i32 = arith.constant 0 : i32
    %c8_i32 = arith.constant 8 : i32
    %1 = arith.muli %c0_i32, %c8_i32 : i32
    %2 = tpu.assume_multiple %1, 8 : i32
    %c0 = arith.constant 0 : index
    %3 = arith.index_cast %2 : i32 to index
    %c0_0 = arith.constant 0 : index
    %4 = vector.load %arg1[%c0, %3, %c0_0] : memref<2x8x128xf32, #tpu.memory_space<vmem>>, vector<2x8x128xf32>
    %c0_1 = arith.constant 0 : index
    %5 = arith.index_cast %2 : i32 to index
    %c0_2 = arith.constant 0 : index
    %6 = vector.load %arg2[%c0_1, %5, %c0_2] : memref<2x8x128xf32, #tpu.memory_space<vmem>>, vector<2x8x128xf32>
    %7 = arith.mulf %4, %6 : vector<2x8x128xf32>
    %cst_3 = arith.constant dense<0.000000e+00> : vector<2x128xf32>
    %8 = vector.multi_reduction <add>, %7, %cst_3 [1] : vector<2x8x128xf32> to vector<2x128xf32>
    %9 = arith.addf %0, %8 : vector<2x128xf32>
    %cst_4 = arith.constant dense<0.000000e+00> : vector<2x128xf32>
    %10 = vector.multi_reduction <add>, %4, %cst_4 [1] : vector<2x8x128xf32> to vector<2x128xf32>
    %11 = arith.addf %0, %10 : vector<2x128xf32>
    %cst_5 = arith.constant dense<0.000000e+00> : vector<2x128xf32>
    %12 = vector.multi_reduction <add>, %6, %cst_5 [1] : vector<2x8x128xf32> to vector<2x128xf32>
    %13 = arith.addf %0, %12 : vector<2x128xf32>
    %c1_i32 = arith.constant 1 : i32
    %c0_6 = arith.constant 0 : index
    %c0_7 = arith.constant 0 : index
    %c0_8 = arith.constant 0 : index
    %14 = vector.load %arg3[%c0_6, %c0_7, %c0_8] : memref<3x2x128xf32, #tpu.memory_space<vmem>>, vector<1x2x128xf32>
    %15 = vector.shape_cast %14 : vector<1x2x128xf32> to vector<2x128xf32>
    %16 = vector.shape_cast %9 : vector<2x128xf32> to vector<1x2x128xf32>
    tpu.vector_store %arg3[%c0_6, %c0_7, %c0_8], %16 {strides = array<i32>} : memref<3x2x128xf32, #tpu.memory_space<vmem>>, vector<1x2x128xf32>,
    %c1 = arith.constant 1 : index
    %c0_9 = arith.constant 0 : index
    %c0_10 = arith.constant 0 : index
    %17 = vector.load %arg3[%c1, %c0_9, %c0_10] : memref<3x2x128xf32, #tpu.memory_space<vmem>>, vector<1x2x128xf32>
    %18 = vector.shape_cast %17 : vector<1x2x128xf32> to vector<2x128xf32>
    %19 = vector.shape_cast %11 : vector<2x128xf32> to vector<1x2x128xf32>
    tpu.vector_store %arg3[%c1, %c0_9, %c0_10], %19 {strides = array<i32>} : memref<3x2x128xf32, #tpu.memory_space<vmem>>, vector<1x2x128xf32>,
    %c2 = arith.constant 2 : index
    %c0_11 = arith.constant 0 : index
    %c0_12 = arith.constant 0 : index
    %20 = vector.load %arg3[%c2, %c0_11, %c0_12] : memref<3x2x128xf32, #tpu.memory_space<vmem>>, vector<1x2x128xf32>
    %21 = vector.shape_cast %20 : vector<1x2x128xf32> to vector<2x128xf32>
    %22 = vector.shape_cast %13 : vector<2x128xf32> to vector<1x2x128xf32>
    tpu.vector_store %arg3[%c2, %c0_11, %c0_12], %22 {strides = array<i32>} : memref<3x2x128xf32, #tpu.memory_space<vmem>>, vector<1x2x128xf32>,
    return
  }
  func.func @transform_0(%arg0: i32) -> (i32, i32, i32) {
    %c0_i32 = arith.constant 0 : i32
    %c0_i32_0 = arith.constant 0 : i32
    %c0_i32_1 = arith.constant 0 : i32
    return %c0_i32, %arg0, %c0_i32_0 : i32, i32, i32
  }
  func.func @transform_1(%arg0: i32) -> (i32, i32, i32) {
    %c0_i32 = arith.constant 0 : i32
    %c0_i32_0 = arith.constant 0 : i32
    %c0_i32_1 = arith.constant 0 : i32
    return %c0_i32, %arg0, %c0_i32_0 : i32, i32, i32
  }
  func.func @transform_2(%arg0: i32) -> (i32, i32, i32) {
    %c0_i32 = arith.constant 0 : i32
    %c0_i32_0 = arith.constant 0 : i32
    %c0_i32_1 = arith.constant 0 : i32
    return %c0_i32, %c0_i32_0, %arg0 : i32, i32, i32
  }
}

</mosaic_0001>

<bundles_post_ra>
// kernel: tpu_custom_call.1
= control target key start
LH: loop header
LB: loop body
LE: loop exit
PB: predicated region body
PF: predicated region fallthrough
CT: control target
= control target key end

     0   :  { %7 = vsyncpa [#allocation3], 0  ;;  %s264_s0 = inlined_call_operand.hbm [shape: f32[2,8,128], index: 0, kind: input, shape index: {}]   ;;  %s265_s1 = inlined_call_operand.hbm [shape: f32[2,8,128], index: 1, kind: input, shape index: {}]   ;;  %s266_s2 = inlined_call_operand.hbm [shape: f32[3,2,128], index: 2, kind: output, shape index: {}]  }
   0x1   :  { %8 = vsyncpa [#allocation6], 0 }
   0x2   :  { %9 = vsyncpa [#allocation4], 0  ;;  %s203_s9 = smov [#allocation2]   ;;  %s131_s13 = scalar_lea.hbm %s264_s0, 256 }
   0x3   :  { %s15_s10 = sshll.u32 %s203_s9, 4  ;;  %p132_p0 = scmp.ne.s32.totalorder %s264_s0, %s131_s13  ;;  %s16_s10 = int_to_ptr.vmem [resolvable:$true] %s15_s10 }
   0x4   :  { %p135_p1 = scmp.lt.u32.totalorder %s131_s13, %s264_s0 }
   0x6   :  { %p137_p2 = pnand %p135_p1, %p132_p0 }
   0x8   :  { %140 = shalt.err (!%p137_p2)
}
   0x9   :  { %s141_s18 = scalar_lea.vmem %s16_s10, 256  ;;  %p146_p4 = scmp.lt.s32.totalorder %s16_s10, %s16_s10 }
   0xa   :  { %p142_p3 = scmp.ne.s32.totalorder %s16_s10, %s141_s18  ;;  %p147_p5 = scmp.lt.s32.totalorder %s141_s18, %s141_s18 }
   0xc   :  { %p148_p6 = por %p147_p5, %p146_p4 }
   0xe   :  { %p149_p7 = pnand %p148_p6, %p142_p3 }
  0x10   :  { %152 = shalt.err (!%p149_p7)
}
  0x11   :  { %s204_s19 = smov 128   ;;  %s205_s20 = smov 8  }
  0x12   :  { %21 = dma.hbm_to_vmem [thread:$0]  %s264_s0, 256, %s16_s10, [#allocation3], %s204_s19, %s204_s19, %s205_s20  }
  0x13   :  { %s206_s23 = smov [#allocation5]   ;;  %s153_s27 = scalar_lea.hbm %s265_s1, 256 }
  0x14   :  { %s27_s24 = sshll.u32 %s206_s23, 4  ;;  %p154_p8 = scmp.ne.s32.totalorder %s265_s1, %s153_s27  ;;  %s28_s24 = int_to_ptr.vmem [resolvable:$true] %s27_s24 }
  0x15   :  { %p157_p9 = scmp.lt.u32.totalorder %s153_s27, %s265_s1 }
  0x17   :  { %p159_p10 = pnand %p157_p9, %p154_p8 }
  0x19   :  { %162 = shalt.err (!%p159_p10)
}
  0x1a   :  { %s163_s4 = scalar_lea.vmem %s28_s24, 256  ;;  %p168_p12 = scmp.lt.s32.totalorder %s28_s24, %s28_s24 }
  0x1b   :  { %p164_p11 = scmp.ne.s32.totalorder %s28_s24, %s163_s4  ;;  %p169_p13 = scmp.lt.s32.totalorder %s163_s4, %s163_s4 }
  0x1d   :  { %p170_p0 = por %p169_p13, %p168_p12 }
  0x1f   :  { %p171_p1 = pnand %p170_p0, %p164_p11 }
  0x21   :  { %174 = shalt.err (!%p171_p1)
}
  0x22   :  { %33 = dma.hbm_to_vmem [thread:$0]  %s265_s1, 256, %s28_s24, [#allocation6], %s204_s19, %s204_s19, %s205_s20  }
  0x23   :  { %197 = dma.done.wait [#allocation3], 256  }
  0x24   :  { %198 = vsyncadd [#allocation3], 4294967040 }
  0x25   :  { %199 = dma.done.wait [#allocation6], 256  }
  0x26   :  { %200 = vsyncadd [#allocation6], 4294967040  ;;  %v40_v0 = vld [vmem:[#allocation2] sm:$0xff]  ;;  %v41_v1 = vld [vmem:[#allocation2 + $0x8] sm:$0xff]  ;;  %vm90_vm0 = vcmask 1041409   ;;  %s207_s1 = smov [#allocation7]  }
  0x27   :  { %v42_v2 = vld [vmem:[#allocation5] sm:$0xff]  ;;  %v43_v3 = vld [vmem:[#allocation5 + $0x8] sm:$0xff]  ;;  %v60_v5 = vrot.slane %v40_v0, 4  ;;  %v66_v6 = vrot.slane %v41_v1, 4  ;;  %s111_s6 = sshll.u32 %s207_s1, 4  ;;  %s112_s6 = int_to_ptr.vmem [resolvable:$true] %s111_s6 }
  0x28   :  { %v44_v4 = vmul.f32 %v42_v2, %v40_v0  ;;  %v74_v7 = vrot.slane %v42_v2, 4  ;;  %v45_v8 = vmul.f32 %v43_v3, %v41_v1  ;;  %v80_v9 = vrot.slane %v43_v3, 4  ;;  %s175_s7 = scalar_lea.vmem %s112_s6, 96  ;;  %p180_p3 = scmp.lt.s32.totalorder %s112_s6, %s112_s6 }
  0x29   :  { %v61_v11 = vadd.f32 %v60_v5, %v40_v0  ;;  %v67_v12 = vadd.f32 %v66_v6, %v41_v1  ;;  %p176_p2 = scmp.ne.s32.totalorder %s112_s6, %s175_s7  ;;  %p181_p4 = scmp.lt.s32.totalorder %s175_s7, %s175_s7 }
  0x2a   :  { %v46_v10 = vrot.slane %v44_v4, 4  ;;  %v75_v13 = vadd.f32 %v74_v7, %v42_v2  ;;  %v52_v14 = vrot.slane %v45_v8, 4  ;;  %v81_v15 = vadd.f32 %v80_v9, %v43_v3 }
  0x2b   :  { %v62_v17 = vrot.slane %v61_v11, 2  ;;  %v68_v18 = vrot.slane %v67_v12, 2  ;;  %p182_p5 = por %p181_p4, %p180_p3 }
  0x2c   :  { %v47_v16 = vadd.f32 %v46_v10, %v44_v4  ;;  %v76_v19 = vrot.slane %v75_v13, 2  ;;  %v53_v20 = vadd.f32 %v52_v14, %v45_v8  ;;  %v82_v21 = vrot.slane %v81_v15, 2 }
  0x2d   :  { %v63_v23 = vadd.f32 %v62_v17, %v61_v11  ;;  %v69_v24 = vadd.f32 %v68_v18, %v67_v12  ;;  %p183_p6 = pnand %p182_p5, %p176_p2 }
  0x2e   :  { %v48_v22 = vrot.slane %v47_v16, 2  ;;  %v77_v25 = vadd.f32 %v76_v19, %v75_v13  ;;  %v54_v26 = vrot.slane %v53_v20, 2  ;;  %v83_v27 = vadd.f32 %v82_v21, %v81_v15 }
  0x2f   :  { %v64_v29 = vrot.slane %v63_v23, 1  ;;  %v70_v30 = vrot.slane %v69_v24, 1 }
  0x30   :  { %v49_v28 = vadd.f32 %v48_v22, %v47_v16  ;;  %v78_v31 = vrot.slane %v77_v25, 1  ;;  %v55_v32 = vadd.f32 %v54_v26, %v53_v20  ;;  %v84_v33 = vrot.slane %v83_v27, 1 }
  0x31   :  { %v65_v35 = vadd.f32 %v64_v29, %v63_v23  ;;  %v71_v36 = vadd.f32 %v70_v30, %v69_v24 }
  0x32   :  { %v50_v34 = vrot.slane %v49_v28, 1  ;;  %v79_v37 = vadd.f32 %v78_v31, %v77_v25  ;;  %v56_v38 = vrot.slane %v55_v32, 1  ;;  %v85_v39 = vadd.f32 %v84_v33, %v83_v27 }
  0x33   :  { %v96_v41 = vsel %vm90_vm0, %v71_v36, %v65_v35 }
  0x34   :  { %v51_v40 = vadd.f32 %v50_v34, %v49_v28  ;;  %v57_v42 = vadd.f32 %v56_v38, %v55_v32  ;;  %99 = vst [vmem:[#allocation7 + $0x2] sm:$0x3] %v96_v41  ;;  %v102_v43 = vsel %vm90_vm0, %v85_v39, %v79_v37 }
  0x35   :  { %105 = vst [vmem:[#allocation7 + $0x4] sm:$0x3] %v102_v43 }
  0x36   :  { %v91_v44 = vsel %vm90_vm0, %v57_v42, %v51_v40 }
  0x37   :  { %93 = vst [vmem:[#allocation7] sm:$0x3] %v91_v44 }
  0x38   :  { %186 = shalt.err (!%p183_p6)
}
  0x39   :  { %s187_s10 = scalar_lea.hbm %s266_s2, 96 }
  0x3a   :  { %p188_p7 = scmp.ne.s32.totalorder %s266_s2, %s187_s10  ;;  %p191_p8 = scmp.lt.u32.totalorder %s187_s10, %s266_s2 }
  0x3c   :  { %p193_p9 = pnand %p191_p8, %p188_p7 }
  0x3e   :  { %196 = shalt.err (!%p193_p9)
}
  0x3f   :  { %s208_s15 = smov 32   ;;  %s209_s16 = smov 2  }
  0x40   :  { %117 = dma.vmem_to_hbm [thread:$0]  %s112_s6, 96, %s266_s2, [#allocation4], %s208_s15, %s208_s15, %s209_s16  }
  0x41   :  { %201 = dma.done.wait [#allocation4], 96  }
  0x42   :  { %202 = vsyncadd [#allocation4], 4294967200 }
  0x43   :  { %121 = vsyncpa [#allocation3], 1 }
  0x44   :  { %122 = vsyncpa [#allocation6], 1 }
  0x45   :  { %123 = vsyncpa [#allocation4], 1 }

</bundles_post_ra>
